<compile_context>
chip_gen: v7x
topology: tpu7x:2x2x1
jax: 0.10.0
libtpu: 0.0.40
codegen_flags: <defaults>
</compile_context>

<pallas_src>
import jax
import jax.numpy as jnp
from jax import lax
from jax.experimental import pallas as pl
from jax.experimental.pallas import tpu as pltpu


def _round_up(x, m):
    return (x + m - 1) // m * m


def _cdiv(a, b):
    return -(-a // b)


def _choose_tile_cols(P, N, max_cols=32768, min_steps=8):
    """Pick a lane-dense pixel tile width.

    Start from the full (128-rounded) pixel extent capped at `max_cols`
    (~6 MiB double-buffered VMEM, fine even on v5e's 16 MiB default scope),
    then shrink in halves — never below 4096 columns — until the total grid
    step count N * ceil(P/TM) reaches `min_steps`, so both v7x TensorCores
    get work and each still pipelines.
    """
    tm = min(_round_up(max_cols, 128), _round_up(P, 128))
    floor = min(tm, 4096)
    while N * _cdiv(P, tm) < min_steps and tm > floor:
        tm = max(floor, _round_up(_cdiv(tm, 2), 128))
    return tm


# ---------------------------------------------------------------------------
# Pallas kernel: channel-major 1x1-conv head + split activations
# ---------------------------------------------------------------------------
def _head_kernel(x_ref, w_ref, b_ref, o_ref):
    # x_ref: (C_feat, TM)   channel-major pixel tile (bf16)
    # w_ref: (C_out, C_feat) 1x1 conv weight (bf16)
    # b_ref: (C_out, 1)      bias (f32)
    # o_ref: (C_out, TM)     activated predictions (f32), channel-major
    y = jnp.dot(w_ref[...], x_ref[...], preferred_element_type=jnp.float32)
    y = y + b_ref[...]                                    # lane-broadcast bias

    # channels 0:3 -> sigmoid (point), 3:5 -> tanh (angle)
    point = jax.nn.sigmoid(y[0:3, :])
    angle = jnp.tanh(y[3:5, :])

    # channels 5: -> stable softmax over the channel (sublane) axis
    cls = y[5:, :]
    m = jnp.max(cls, axis=0, keepdims=True)
    e = jnp.exp(cls - m)
    s = jnp.sum(e, axis=0, keepdims=True)
    soft = e * pl.reciprocal(s, approx=False)             # exact recip (sum-to-1)

    # Assemble the full (C_out, TM) tile and write it with ONE unmasked store
    # (no partial-sublane vst.msk at offsets 3 / 5).
    o_ref[...] = jnp.concatenate([point, angle, soft], axis=0).astype(o_ref.dtype)


def directional_corner_head(feats_cmaj, w, b, *, max_tile_cols=32768, min_grid_steps=8):
    """feats_cmaj: (N, C_feat, P) channel-major pixels; w: (C_out, C_feat); b: (C_out,)."""
    N, C_feat, P = feats_cmaj.shape
    C_out = w.shape[0]

    tm = _choose_tile_cols(P, N, max_tile_cols, min_grid_steps)
    grid = (N, _cdiv(P, tm))                   # ragged tail handled by Pallas masking

    w = w.astype(feats_cmaj.dtype)             # bf16 x bf16 -> f32 acc on the MXU
    b2 = b.reshape(C_out, 1).astype(jnp.float32)

    out = pl.pallas_call(
        _head_kernel,
        out_shape=jax.ShapeDtypeStruct((N, C_out, P), jnp.float32),
        grid_spec=pltpu.PrefetchScalarGridSpec(
            num_scalar_prefetch=0,
            grid=grid,
            in_specs=[
                pl.BlockSpec((None, C_feat, tm), lambda n, t: (n, 0, t)),
                pl.BlockSpec((C_out, C_feat), lambda n, t: (0, 0)),
                pl.BlockSpec((C_out, 1), lambda n, t: (0, 0)),
            ],
            out_specs=pl.BlockSpec((None, C_out, tm), lambda n, t: (n, 0, t)),
        ),
        compiler_params=pltpu.CompilerParams(
            dimension_semantics=("parallel", "parallel"),
        ),
    )(feats_cmaj, w, b2)
    return out                                  # (N, C_out, P) — no slice, no pad


# ---------------------------------------------------------------------------
# Stand-in backbone (Cnn_Backbone definition not provided)
# TODO(synk): Cnn_Backbone is unspecified in the reference; using a single
#             deterministic 3x3 conv + ReLU stand-in computed in plain JAX,
#             emitting NCHW bf16 features directly (the cast fuses into the
#             conv epilogue -> no standalone HBM cast pass).
# ---------------------------------------------------------------------------
def backbone(x_nchw, w_hwio, b, *, out_dtype=jnp.bfloat16):
    y = lax.conv_general_dilated(
        x_nchw, w_hwio,
        window_strides=(1, 1), padding="SAME",
        dimension_numbers=("NCHW", "HWIO", "NCHW"),
    )
    y = jax.nn.relu(y + b[None, :, None, None])            # (N, C_feat, H, W)
    return y.astype(out_dtype)


# ---------------------------------------------------------------------------
# Full model forward (NCHW in, NCHW out — matches the PyTorch module)
# ---------------------------------------------------------------------------
def directional_corner_detection_forward(x_nchw, params, *, feat_dtype=jnp.bfloat16):
    feats = backbone(x_nchw, params["bb_w"], params["bb_b"], out_dtype=feat_dtype)
    N, Cf, H, W = feats.shape
    feats_cmaj = feats.reshape(N, Cf, H * W)   # free reshape (contiguous trailing dims)
    preds = directional_corner_head(
        feats_cmaj, params["head_w"], params["head_b"]
    )                                          # (N, C_out, H*W)
    return preds.reshape(N, -1, H, W)          # already NCHW


# ---------------------------------------------------------------------------
# Pure-JAX reference for verification (same bf16 quantization of the head
# inputs/weights so the comparison is apples-to-apples)
# ---------------------------------------------------------------------------
def reference_forward(x_nchw, params, *, feat_dtype=jnp.bfloat16):
    feats = backbone(x_nchw, params["bb_w"], params["bb_b"], out_dtype=feat_dtype)
    w = params["head_w"].astype(feat_dtype)
    y = jnp.einsum("oc,nchw->nohw", w, feats, preferred_element_type=jnp.float32)
    y = y + params["head_b"][None, :, None, None]
    point = jax.nn.sigmoid(y[:, 0:3])
    angle = jnp.tanh(y[:, 3:5])
    cls = jax.nn.softmax(y[:, 5:], axis=1)
    return jnp.concatenate([point, angle, cls], axis=1)


if __name__ == "__main__":
    # Small deterministic config:
    #   input  (N, C_in, H, W) = (2, 3, 16, 16)
    #   backbone features Cf = 32
    #   num_classes = 3  =>  head output channels = 5 + 3 = 8
    N, C_in, H, W = 2, 3, 16, 16
    C_feat = 32
    num_classes = 3
    C_out = 5 + num_classes

    key = jax.random.PRNGKey(0)
    k_x, k_bw, k_bb, k_hw, k_hb = jax.random.split(key, 5)

    x = jax.random.normal(k_x, (N, C_in, H, W), dtype=jnp.float32)
    params = {
        "bb_w": 0.1 * jax.random.normal(k_bw, (3, 3, C_in, C_feat), jnp.float32),
        "bb_b": 0.1 * jax.random.normal(k_bb, (C_feat,), jnp.float32),
        # PyTorch Conv2d 1x1 layout: (out_channels, in_channels)
        "head_w": 0.1 * jax.random.normal(k_hw, (C_out, C_feat), jnp.float32),
        "head_b": 0.1 * jax.random.normal(k_hb, (C_out,), jnp.float32),
    }

    fwd = jax.jit(directional_corner_detection_forward)

    # --- test 1: tile-aligned pixel count (H*W = 256) -----------------------
    out = jax.block_until_ready(fwd(x, params))
    ref = reference_forward(x, params)
    assert out.shape == (N, C_out, H, W)
    assert jnp.allclose(out, ref, atol=2e-4, rtol=2e-4), "mismatch vs reference"
    # sanity: class channels form a distribution
    assert jnp.allclose(jnp.sum(out[:, 5:], axis=1), 1.0, atol=1e-4)

    # --- test 2: ragged pixel count (H*W = 320, not a multiple of 128) ------
    # exercises the masked partial-tile path (no wrapper pad / output slice).
    H2, W2 = 16, 20
    x2 = jax.random.normal(jax.random.PRNGKey(1), (N, C_in, H2, W2), jnp.float32)
    out2 = jax.block_until_ready(fwd(x2, params))
    ref2 = reference_forward(x2, params)
    assert out2.shape == (N, C_out, H2, W2)
    assert jnp.allclose(out2, ref2, atol=2e-4, rtol=2e-4), "ragged mismatch vs reference"
    assert jnp.allclose(jnp.sum(out2[:, 5:], axis=1), 1.0, atol=1e-4)

    print("KERNEL_OK")
</pallas_src>

<mosaic_0001>
module attributes {stable_mosaic.version = 11 : i64} {
  func.func @_head_kernel(%arg0: i32, %arg1: i32, %arg2: memref<1x32x256xbf16, #tpu.memory_space<vmem>>, %arg3: memref<8x32xbf16, #tpu.memory_space<vmem>>, %arg4: memref<8x1xf32, #tpu.memory_space<vmem>>, %arg5: memref<1x8x256xf32, #tpu.memory_space<vmem>>) attributes {dimension_semantics = [#tpu.dimension_semantics<parallel>, #tpu.dimension_semantics<parallel>], iteration_bounds = array<i64: 2, 1>, scalar_prefetch = 0 : i64, scratch_operands = 0 : i64, tpu.core_type = #tpu.core_type<tc>, window_params = [{transform_indices = @transform_0, window_bounds = array<i64: 1, 32, 256>}, {pipeline_mode = #tpu.pipeline_mode<synchronous>, transform_indices = @transform_1, window_bounds = array<i64: 8, 32>}, {pipeline_mode = #tpu.pipeline_mode<synchronous>, transform_indices = @transform_2, window_bounds = array<i64: 8, 1>}, {transform_indices = @transform_3, window_bounds = array<i64: 1, 8, 256>}]} {
    %c0 = arith.constant 0 : index
    %c0_0 = arith.constant 0 : index
    %0 = vector.load %arg3[%c0, %c0_0] : memref<8x32xbf16, #tpu.memory_space<vmem>>, vector<8x32xbf16>
    %c0_1 = arith.constant 0 : index
    %c0_2 = arith.constant 0 : index
    %c0_3 = arith.constant 0 : index
    %1 = vector.load %arg2[%c0_1, %c0_2, %c0_3] : memref<1x32x256xbf16, #tpu.memory_space<vmem>>, vector<1x32x256xbf16>
    %2 = vector.shape_cast %1 : vector<1x32x256xbf16> to vector<32x256xbf16>
    %cst = arith.constant dense<0.000000e+00> : vector<8x256xf32>
    %3 = tpu.matmul %0, %2, %cst {dimension_numbers = #tpu.dot_dimension_numbers<[1], [0], [0], [1], [0, 0, 1, 1], [], []>} : vector<8x32xbf16>, vector<32x256xbf16>, vector<8x256xf32> -> vector<8x256xf32>
    %c0_4 = arith.constant 0 : index
    %c0_5 = arith.constant 0 : index
    %4 = vector.load %arg4[%c0_4, %c0_5] : memref<8x1xf32, #tpu.memory_space<vmem>>, vector<8x1xf32>
    %5 = vector.broadcast %4 : vector<8x1xf32> to vector<8x256xf32>
    %6 = arith.addf %3, %5 : vector<8x256xf32>
    %7 = vector.extract_strided_slice %6 {offsets = [0, 0], sizes = [3, 256], strides = [1, 1]} : vector<8x256xf32> to vector<3x256xf32>
    %8 = arith.negf %7 : vector<3x256xf32>
    %9 = math.exp %8 : vector<3x256xf32>
    %cst_6 = arith.constant 1.000000e+00 : f32
    %10 = vector.broadcast %cst_6 : f32 to vector<3x256xf32>
    %11 = arith.addf %10, %9 : vector<3x256xf32>
    %12 = arith.divf %10, %11 : vector<3x256xf32>
    %13 = vector.extract_strided_slice %6 {offsets = [3, 0], sizes = [2, 256], strides = [1, 1]} : vector<8x256xf32> to vector<2x256xf32>
    %14 = math.tanh %13 : vector<2x256xf32>
    %15 = vector.extract_strided_slice %6 {offsets = [5, 0], sizes = [3, 256], strides = [1, 1]} : vector<8x256xf32> to vector<3x256xf32>
    %cst_7 = arith.constant dense<0xFF800000> : vector<256xf32>
    %16 = vector.multi_reduction <maximumf>, %15, %cst_7 [0] : vector<3x256xf32> to vector<256xf32>
    %17 = vector.shape_cast %16 : vector<256xf32> to vector<1x256xf32>
    %18 = vector.broadcast %17 : vector<1x256xf32> to vector<3x256xf32>
    %19 = arith.subf %15, %18 : vector<3x256xf32>
    %20 = math.exp %19 : vector<3x256xf32>
    %cst_8 = arith.constant dense<0.000000e+00> : vector<256xf32>
    %21 = vector.multi_reduction <add>, %20, %cst_8 [0] : vector<3x256xf32> to vector<256xf32>
    %22 = vector.shape_cast %21 : vector<256xf32> to vector<1x256xf32>
    %23 = tpu.reciprocal %22 : vector<1x256xf32> -> vector<1x256xf32>
    %24 = vector.broadcast %23 : vector<1x256xf32> to vector<3x256xf32>
    %25 = arith.mulf %20, %24 : vector<3x256xf32>
    %26 = tpu.concatenate %12, %14, %25 in 0 : vector<3x256xf32>, vector<2x256xf32>, vector<3x256xf32> -> vector<8x256xf32>
    %c0_9 = arith.constant 0 : index
    %c0_10 = arith.constant 0 : index
    %c0_11 = arith.constant 0 : index
    %27 = vector.load %arg5[%c0_9, %c0_10, %c0_11] : memref<1x8x256xf32, #tpu.memory_space<vmem>>, vector<1x8x256xf32>
    %28 = vector.shape_cast %27 : vector<1x8x256xf32> to vector<8x256xf32>
    %29 = vector.shape_cast %26 : vector<8x256xf32> to vector<1x8x256xf32>
    tpu.vector_store %arg5[%c0_9, %c0_10, %c0_11], %29 {strides = array<i32>} : memref<1x8x256xf32, #tpu.memory_space<vmem>>, vector<1x8x256xf32>,
    return
  }
  func.func @transform_0(%arg0: i32, %arg1: i32) -> (i32, i32, i32) {
    %c0_i32 = arith.constant 0 : i32
    %c0_i32_0 = arith.constant 0 : i32
    return %arg0, %c0_i32, %arg1 : i32, i32, i32
  }
  func.func @transform_1(%arg0: i32, %arg1: i32) -> (i32, i32) {
    %c0_i32 = arith.constant 0 : i32
    %c0_i32_0 = arith.constant 0 : i32
    %c0_i32_1 = arith.constant 0 : i32
    return %c0_i32, %c0_i32_0 : i32, i32
  }
  func.func @transform_2(%arg0: i32, %arg1: i32) -> (i32, i32) {
    %c0_i32 = arith.constant 0 : i32
    %c0_i32_0 = arith.constant 0 : i32
    %c0_i32_1 = arith.constant 0 : i32
    return %c0_i32, %c0_i32_0 : i32, i32
  }
  func.func @transform_3(%arg0: i32, %arg1: i32) -> (i32, i32, i32) {
    %c0_i32 = arith.constant 0 : i32
    %c0_i32_0 = arith.constant 0 : i32
    return %arg0, %c0_i32, %arg1 : i32, i32, i32
  }
}

</mosaic_0001>

<bundles_post_ra>
// kernel: directional_corner_detection_forward.1
= control target key start
LH: loop header
LB: loop body
LE: loop exit
PB: predicated region body
PF: predicated region fallthrough
CT: control target
= control target key end

     0   :  { %s558_s12 = smov 0   ;;  %s560_s13 = smov 0   ;;  %s605_s0 = inlined_call_operand.vmem [shape: bf16[2,32,256], index: 0, kind: input, shape index: {}]   ;;  %s606_s1 = inlined_call_operand.vmem [shape: bf16[8,32], index: 1, kind: input, shape index: {}]   ;;  %s607_s2 = inlined_call_operand.vmem [shape: f32[8,1], index: 2, kind: input, shape index: {}]   ;;  %s608_s3 = inlined_call_operand.vmem [shape: f32[2,8,256], index: 3, kind: output, shape index: {}]  }
   0x1   :  { %s562_s14 = smov 0  }
   0x2 LB: > { %s25_s15 = sadd.s32 1, %s531_s13  ;;  %p445_p0 = scmp.ge.s32.totalorder %s535_s14, 1  ;;  %s535_s14 = sphi %s562_s14, %s13_s14   ;;  %s531_s13 = sphi %s560_s13, %s610_s13   ;;  %s527_s12 = sphi %s558_s12, %s609_s12  }
   0x3   : > { %p27_p1 = scmp.ge.s32.totalorder %s25_s15, 2  ;;  %p158_p2 = scmp.lt.s32.totalorder %s535_s14, 3 }
   0x5   : > { %s612_s15 = smov (%p27_p1, %s25_s15), 0  ;;  %p159_p3 = pnand %p445_p0, %p158_p2 }
   0x6   : > { %p191_p4 = scmp.lt.s32.totalorder (!%p159_p3), %s527_s12, 1  ;;  %v216_v0 = vld [vmem:[%s607_s2] sm:$0xff] (!%p159_p3)  ;;  %v537_v1 = vmov (!%p159_p3), 0   ;;  %vm242_vm0 = vcmask (!%p159_p3), 261120   ;;  %vm301_vm1 = vcmask (!%p159_p3), 1047557   ;;  %vm328_vm2 = vcmask (!%p159_p3), 1042432  }
   0x7   : > { %162 = sbr.rel (%p159_p3) target bundleno = 299 (0x12b), region = 32  ;;  %278 = vmatprep.mubr.bf16.mxu0 (!%p159_p3), %v537_v1  ;;  %486 = vset.pattern.permute.xlu0 (!%p159_p3), %v537_v1  ;;  %v211_v6 = vld [vmem:[%s606_s1] sm:$0xf] (!%p159_p3)  ;;  %vm349_vm3 = vcmask (!%p159_p3), 1044480  }
   0x8   : > { %219 = vperm.xlu0 (!%p159_p3), %486, %v216_v0  }
   0xe   : > { %s614_s12 = smov (!%p191_p4, %s527_s12), 1 }
   0xf   : > { %s459_s18 = sshll.u32 %s614_s12, 5  ;;  %s460_s24 = sshll.u32 %s614_s12, 4 }
  0x10   : > { %s198_s21 = scalar_lea.vmem %s605_s0, %s459_s18  ;;  %s208_s27 = scalar_lea.vmem %s608_s3, %s460_s24 }
  0x11   : > { %v487_v2 = vld [vmem:[%s198_s21 + $0x4] ss:$8 sps:$4 sm:$0xff]   ;;  %v489_v3 = vld [vmem:[%s198_s21] ss:$8 sps:$4 sm:$0xff]   ;;  %v490_v4 = vld [vmem:[%s198_s21 + $0x14] ss:$8 sps:$4 sm:$0xff]  }
  0x12   : > { %246 = vmatprep.subr.bf16.mxu0 %v487_v2  ;;  %v492_v5 = vld [vmem:[%s198_s21 + $0x10] ss:$8 sps:$4 sm:$0xff]  }
  0x13   : > { %247 = vmatpush1.bf16.msra.mxu0 %v489_v3 }
  0x14   : > { %248 = vmatprep.subr.bf16.mxu0 %v490_v4 }
  0x17   : > { %249 = vmatpush1.bf16.msra.mxu0 %v492_v5 }
  0x1a   : > { %454 = vmatmul.mubr.msk.bf16.vlgmr.msra.gmra.mrb[0].mxu0 %vm242_vm0, %v211_v6 }
  0x87   : > { %v220_v7 = vpop.permute.xlu0 %219 }
  0xed   : > { %v280_v8 = vpop.f32.mrb[0].mxu0 }
  0xee   : > { %v281_v9 = vadd.f32 %v280_v8, %v220_v7  ;;  %v282_v10 = vpop.f32.mrb[1].mxu0 }
  0xef   : > { %v283_v11 = vadd.f32 %v282_v10, %v220_v7  ;;  %v284_v12 = vpop.f32.mrb[2].mxu0 }
  0xf0   : > { %v302_v13 = vsel %vm301_vm1, %v281_v9, -inf  ;;  %v285_v14 = vpop.f32.mrb[3].mxu0  ;;  %v455_v32 = vmul.f32 -1.442695, %v281_v9 }
  0xf1   : > { %v303_v15 = vrot.slane %v302_v13, 4  ;;  %v309_v16 = vsel %vm301_vm1, %v283_v11, -inf  ;;  %v456_v33 = vmul.f32 -1.442695, %v283_v11 }
  0xf2   : > { %v310_v17 = vrot.slane %v309_v16, 4 }
  0xf3   : > { %v304_v18 = vmax.f32 %v302_v13, %v303_v15 }
  0xf4   : > { %v311_v19 = vmax.f32 %v309_v16, %v310_v17 }
  0xf5   : > { %v305_v20 = vrot.slane %v304_v18, 2 }
  0xf6   : > { %v312_v21 = vrot.slane %v311_v19, 2 }
  0xf7   : > { %v306_v22 = vmax.f32 %v304_v18, %v305_v20 }
  0xf8   : > { %v313_v23 = vmax.f32 %v311_v19, %v312_v21 }
  0xf9   : > { %v307_v24 = vrot.slane %v306_v22, 1 }
  0xfa   : > { %v314_v25 = vrot.slane %v313_v23, 1 }
  0xfb   : > { %v308_v26 = vmax.f32 %v306_v22, %v307_v24 }
  0xfc   : > { %v315_v27 = vmax.f32 %v313_v23, %v314_v25 }
  0xfd   : > { %v316_v28 = vsub.f32 %v281_v9, %v308_v26 }
  0xfe   : > { %v317_v29 = vsub.f32 %v283_v11, %v315_v27 }
  0xff   : > { %v318_v30 = vmul.f32 1.442695, %v316_v28 }
 0x100   : > { %v320_v31 = vmul.f32 1.442695, %v317_v29 }
 0x101   : > { %493 = vpow2.f32 %v318_v30 }
 0x102   : > { %495 = vpow2.f32 %v320_v31 }
 0x103   : > { %497 = vpow2.f32 %v455_v32 }
 0x104   : > { %499 = vpow2.f32 %v456_v33 }
 0x105   : > { %501 = vtanh.f32 %v281_v9 }
 0x10b   : > { %v494_v34 = vpop.eup %493 }
 0x10c   : > { %v496_v35 = vpop.eup %495  ;;  %v324_v36 = vrot.slane %v494_v34, 5 }
 0x10d   : > { %v325_v37 = vrot.slane %v496_v35, 5  ;;  %v498_v43 = vpop.eup %497 }
 0x10e   : > { %v329_v38 = vsel %vm328_vm2, %v324_v36, 0.0  ;;  %v500_v45 = vpop.eup %499  ;;  %v293_v48 = vadd.f32 1.0, %v498_v43 }
 0x10f   : > { %v330_v39 = vrot.slane %v329_v38, 4  ;;  %v336_v40 = vsel %vm328_vm2, %v325_v37, 0.0  ;;  %v294_v50 = vadd.f32 1.0, %v500_v45  ;;  %v502_v56 = vpop.eup %501 }
 0x110   : > { %v337_v41 = vrot.slane %v336_v40, 4  ;;  %503 = vrcp.f32 %v293_v48 }
 0x111   : > { %v331_v42 = vadd.f32 %v330_v39, %v329_v38  ;;  %505 = vrcp.f32 %v294_v50 }
 0x112   : > { %v338_v44 = vadd.f32 %v337_v41, %v336_v40 }
 0x113   : > { %v332_v46 = vrot.slane %v331_v42, 2 }
 0x114   : > { %v339_v47 = vrot.slane %v338_v44, 2 }
 0x115   : > { %v333_v49 = vadd.f32 %v332_v46, %v331_v42 }
 0x116   : > { %v340_v51 = vadd.f32 %v339_v47, %v338_v44 }
 0x117   : > { %v334_v52 = vrot.slane %v333_v49, 1 }
 0x118   : > { %v341_v53 = vrot.slane %v340_v51, 1 }
 0x119   : > { %v335_v54 = vadd.f32 %v334_v52, %v333_v49 }
 0x11a   : > { %v342_v55 = vadd.f32 %v341_v53, %v340_v51  ;;  %v504_v57 = vpop.eup %503 }
 0x11b   : > { %507 = vrcp.f32 %v335_v54  ;;  %v506_v58 = vpop.eup %505  ;;  %v347_v63 = vsel %vm328_vm2, %v504_v57, %v502_v56 }
 0x11c   : > { %509 = vrcp.f32 %v342_v55 }
 0x11d   : > { %511 = vtanh.f32 %v283_v11 }
 0x125   : > { %v508_v59 = vpop.eup %507 }
 0x126   : > { %v510_v60 = vpop.eup %509  ;;  %v345_v61 = vmul.f32 %v508_v59, %v494_v34 }
 0x127   : > { %v512_v62 = vpop.eup %511  ;;  %v346_v0 = vmul.f32 %v510_v60, %v496_v35 }
 0x128   : > { %v350_v1 = vsel %vm349_vm3, %v347_v63, %v345_v61  ;;  %v348_v2 = vsel %vm328_vm2, %v506_v58, %v512_v62 }
 0x129   : > { %352 = vst [vmem:[%s208_s27] sm:$0xff] %v350_v1  ;;  %v351_v3 = vsel %vm349_vm3, %v348_v2, %v346_v0 }
 0x12a   : > { %353 = vst [vmem:[%s208_s27 + $0x8] sm:$0xff] %v351_v3 }
 0x12b PF: > { %s13_s14 = sadd.s32 1, %s535_s14   ;;  %s609_s12 = smov %s531_s13 }
 0x12c   : > { %p10_p5 = scmp.ge.s32.totalorder %s13_s14, 4   ;;  %s610_s13 = smov %s612_s15 }
 0x12e   :  { %12 = sbr.rel (!%p10_p5) target bundleno = 2 (0x2), region = 62 }

</bundles_post_ra>
